<compile_context>
chip_gen: v7x
topology: tpu7x:2x2x1
jax: 0.10.0
libtpu: 0.0.40
codegen_flags: <defaults>
</compile_context>

<pallas_src>
import functools

import jax
import jax.numpy as jnp
from jax.experimental import pallas as pl
from jax.experimental.pallas import tpu as pltpu


def _round_up(x, m):
    return ((x + m - 1) // m) * m


def _mlp2_kernel(x_ref, w0_ref, b0_ref, w1_ref, b1_ref, o_ref, *, compute_dtype):
    # (TB, D_in) -> fc0 -> (TB, D_bot) -> fc1 -> (TB, C).
    # Two MXU passes, f32 accumulation, f32 bias adds; operands cast in-kernel so
    # the wrapper never materializes a converted copy in HBM.
    x = x_ref[...].astype(compute_dtype)
    w0 = w0_ref[...].astype(compute_dtype)
    h = jnp.dot(x, w0, preferred_element_type=jnp.float32) + b0_ref[...]
    w1 = w1_ref[...].astype(compute_dtype)
    y = jnp.dot(h.astype(compute_dtype), w1, preferred_element_type=jnp.float32)
    o_ref[...] = (y + b1_ref[...]).astype(o_ref.dtype)


@functools.partial(
    jax.jit,
    static_argnames=("compute_dtype", "block_b", "out_dtype", "use_pallas"))
def feat_classifier_two_forward(x, w0, b0, w1, b1, *,
                                compute_dtype=jnp.bfloat16,
                                block_b=256,
                                out_dtype=None,
                                use_pallas=None):
    """out = fc1(fc0(x)), no activation in between (matches the PyTorch module).

    x:  (B, input_dim)            f32
    w0: (input_dim, bottleneck)   fc0 weight, stored transposed (in, out)
    b0: (1, bottleneck)
    w1: (bottleneck, class_num)   fc1 weight, stored transposed (in, out)
    b1: (1, class_num)

    compute_dtype=bf16 is the fast MXU path (f32 accumulation) and returns
    bf16-accurate values; pass compute_dtype=jnp.float32 for full precision.
    """
    B, D_in = x.shape
    Db = w0.shape[1]
    C = w1.shape[1]
    out_dtype = x.dtype if out_dtype is None else jnp.dtype(out_dtype)

    # --- Batch tile: aim for >= 2 grid steps when B allows it (v7x megacore +
    #     DMA/compute overlap); rows a multiple of 16 on the packed-bf16 path.
    sub = 16 if jnp.dtype(compute_dtype) == jnp.dtype(jnp.bfloat16) else 8
    TB = max(sub, min(_round_up(block_b, sub), _round_up(pl.cdiv(B, 2), sub)))
    grid = (pl.cdiv(B, TB),)   # Mosaic clips the partial last tile -> no batch pad.

    # --- VMEM budget (x stays f32 in HBM/VMEM; casts happen in vregs) ----------
    in_b = jnp.dtype(x.dtype).itemsize
    w_b = jnp.dtype(w0.dtype).itemsize
    out_b = jnp.dtype(out_dtype).itemsize
    weight_bytes = (D_in * Db + Db * C) * w_b + (Db + C) * 4
    act_bytes = TB * D_in * in_b + TB * C * out_b          # per pipeline buffer
    scratch_bytes = TB * (Db + C) * 4                      # f32 temporaries
    est = 2 * act_bytes + 2 * weight_bytes + scratch_bytes

    # Generation-aware cap: ~48 MiB on v7x (64 MiB physical), ~96 MiB on v5e/v6e.
    try:
        vmem_cap = int(pltpu.get_tpu_info().vmem_capacity_bytes)
    except Exception:
        vmem_cap = 64 << 20
    vmem_ceiling = int(0.75 * vmem_cap)
    vmem_limit = int(min(max(2 * est, 32 << 20), vmem_ceiling))

    # --- Size gates -------------------------------------------------------------
    fits_vmem = 2 * est <= vmem_ceiling
    tiny = B * max(Db, C) < 8 * 128 * 4   # sub-few-vreg workload: launch cost wins
    if use_pallas is None:
        use_pallas = fits_vmem and not tiny
    if not use_pallas:
        # Plain XLA path for tiny shapes or weights too large for the
        # VMEM-resident scheme (scale-out N/K tiling is left to XLA here).
        h = jnp.dot(x, w0.astype(x.dtype), preferred_element_type=jnp.float32) + b0
        y = jnp.dot(h.astype(x.dtype), w1.astype(x.dtype),
                    preferred_element_type=jnp.float32) + b1
        return y.astype(out_dtype)

    grid_spec = pltpu.PrefetchScalarGridSpec(
        num_scalar_prefetch=0,
        grid=grid,
        in_specs=[
            pl.BlockSpec((TB, D_in), lambda i: (i, 0)),   # batch-tiled activations
            pl.BlockSpec((D_in, Db), lambda i: (0, 0)),   # fc0 weight (VMEM-resident)
            pl.BlockSpec((1, Db), lambda i: (0, 0)),      # fc0 bias
            pl.BlockSpec((Db, C), lambda i: (0, 0)),      # fc1 weight (VMEM-resident)
            pl.BlockSpec((1, C), lambda i: (0, 0)),       # fc1 bias
        ],
        out_specs=pl.BlockSpec((TB, C), lambda i: (i, 0)),
    )

    return pl.pallas_call(
        functools.partial(_mlp2_kernel, compute_dtype=compute_dtype),
        out_shape=jax.ShapeDtypeStruct((B, C), out_dtype),
        grid_spec=grid_spec,
        compiler_params=pltpu.CompilerParams(
            # Batch tiles are independent -> megacore sharding where available.
            dimension_semantics=("parallel",),
            vmem_limit_bytes=vmem_limit,
        ),
    )(x, w0, b0, w1, b1)


def init_params(key, input_dim, bottleneck_dim, class_num, dtype=jnp.float32):
    """Matches init_weights: xavier_normal_ for Linear weights, zero biases.
    Weights are stored transposed (in, out) relative to torch's (out, in)."""
    k0, k1 = jax.random.split(key)
    std0 = (2.0 / (input_dim + bottleneck_dim)) ** 0.5
    std1 = (2.0 / (bottleneck_dim + class_num)) ** 0.5
    w0 = (jax.random.normal(k0, (input_dim, bottleneck_dim)) * std0).astype(dtype)
    b0 = jnp.zeros((1, bottleneck_dim), dtype=dtype)
    w1 = (jax.random.normal(k1, (bottleneck_dim, class_num)) * std1).astype(dtype)
    b1 = jnp.zeros((1, class_num), dtype=dtype)
    return w0, b0, w1, b1


if __name__ == "__main__":
    key = jax.random.PRNGKey(0)
    kx, kp, kb0, kb1 = jax.random.split(key, 4)

    B, input_dim, bottleneck_dim, class_num = 8, 32, 256, 16

    x = jax.random.normal(kx, (B, input_dim), dtype=jnp.float32)
    w0, b0, w1, b1 = init_params(kp, input_dim, bottleneck_dim, class_num)
    # The module zero-inits biases; perturb them here so the kernel's bias path
    # is actually exercised by the numerical check.
    b0 = b0 + 0.1 * jax.random.normal(kb0, b0.shape, dtype=jnp.float32)
    b1 = b1 + 0.1 * jax.random.normal(kb1, b1.shape, dtype=jnp.float32)

    # Reference: exactly the PyTorch module's forward.
    ref = (x @ w0 + b0) @ w1 + b1

    # Full-precision Pallas path (forced; the auto-gate would route this tiny
    # demo shape to XLA).  Tight check.
    out_f32 = jax.block_until_ready(
        feat_classifier_two_forward(x, w0, b0, w1, b1,
                                    compute_dtype=jnp.float32, use_pallas=True))
    assert out_f32.shape == (B, class_num)
    assert jnp.allclose(out_f32, ref, atol=1e-4, rtol=1e-4)

    # Fast bf16 path (f32 accumulation), also forced through Pallas.
    out_bf16 = jax.block_until_ready(
        feat_classifier_two_forward(x, w0, b0, w1, b1, use_pallas=True))
    assert out_bf16.shape == (B, class_num)
    assert jnp.allclose(out_bf16, ref, atol=5e-2, rtol=5e-2)

    # Auto-gated entry point (takes the XLA fallback at this tiny shape).
    out_auto = jax.block_until_ready(feat_classifier_two_forward(x, w0, b0, w1, b1))
    assert jnp.allclose(out_auto, ref, atol=5e-2, rtol=5e-2)

    print("KERNEL_OK")
</pallas_src>

<mosaic_0001>
module attributes {stable_mosaic.version = 11 : i64} {
  func.func @_mlp2_kernel(%arg0: i32, %arg1: memref<8x32xf32, #tpu.memory_space<vmem>>, %arg2: memref<32x256xf32, #tpu.memory_space<vmem>>, %arg3: memref<1x256xf32, #tpu.memory_space<vmem>>, %arg4: memref<256x16xf32, #tpu.memory_space<vmem>>, %arg5: memref<1x16xf32, #tpu.memory_space<vmem>>, %arg6: memref<8x16xf32, #tpu.memory_space<vmem>>) attributes {dimension_semantics = [#tpu.dimension_semantics<parallel>], iteration_bounds = array<i64: 1>, scalar_prefetch = 0 : i64, scratch_operands = 0 : i64, tpu.core_type = #tpu.core_type<tc>, window_params = [{transform_indices = @transform_0, window_bounds = array<i64: 8, 32>}, {pipeline_mode = #tpu.pipeline_mode<synchronous>, transform_indices = @transform_1, window_bounds = array<i64: 32, 256>}, {pipeline_mode = #tpu.pipeline_mode<synchronous>, transform_indices = @transform_2, window_bounds = array<i64: 1, 256>}, {pipeline_mode = #tpu.pipeline_mode<synchronous>, transform_indices = @transform_3, window_bounds = array<i64: 256, 16>}, {pipeline_mode = #tpu.pipeline_mode<synchronous>, transform_indices = @transform_4, window_bounds = array<i64: 1, 16>}, {transform_indices = @transform_5, window_bounds = array<i64: 8, 16>}]} {
    %c0 = arith.constant 0 : index
    %c0_0 = arith.constant 0 : index
    %0 = vector.load %arg1[%c0, %c0_0] : memref<8x32xf32, #tpu.memory_space<vmem>>, vector<8x32xf32>
    %c0_1 = arith.constant 0 : index
    %c0_2 = arith.constant 0 : index
    %1 = vector.load %arg2[%c0_1, %c0_2] : memref<32x256xf32, #tpu.memory_space<vmem>>, vector<32x256xf32>
    %cst = arith.constant dense<0.000000e+00> : vector<8x256xf32>
    %2 = tpu.matmul %0, %1, %cst {dimension_numbers = #tpu.dot_dimension_numbers<[1], [0], [0], [1], [0, 0, 1, 1], [], []>} : vector<8x32xf32>, vector<32x256xf32>, vector<8x256xf32> -> vector<8x256xf32>
    %c0_3 = arith.constant 0 : index
    %c0_4 = arith.constant 0 : index
    %3 = vector.load %arg3[%c0_3, %c0_4] : memref<1x256xf32, #tpu.memory_space<vmem>>, vector<1x256xf32>
    %4 = vector.broadcast %3 : vector<1x256xf32> to vector<8x256xf32>
    %5 = arith.addf %2, %4 : vector<8x256xf32>
    %c0_5 = arith.constant 0 : index
    %c0_6 = arith.constant 0 : index
    %6 = vector.load %arg4[%c0_5, %c0_6] : memref<256x16xf32, #tpu.memory_space<vmem>>, vector<256x16xf32>
    %cst_7 = arith.constant dense<0.000000e+00> : vector<8x16xf32>
    %7 = tpu.matmul %5, %6, %cst_7 {dimension_numbers = #tpu.dot_dimension_numbers<[1], [0], [0], [1], [0, 0, 1, 1], [], []>} : vector<8x256xf32>, vector<256x16xf32>, vector<8x16xf32> -> vector<8x16xf32>
    %c0_8 = arith.constant 0 : index
    %c0_9 = arith.constant 0 : index
    %8 = vector.load %arg5[%c0_8, %c0_9] : memref<1x16xf32, #tpu.memory_space<vmem>>, vector<1x16xf32>
    %9 = vector.broadcast %8 : vector<1x16xf32> to vector<8x16xf32>
    %10 = arith.addf %7, %9 : vector<8x16xf32>
    %c0_10 = arith.constant 0 : index
    %c0_11 = arith.constant 0 : index
    %11 = vector.load %arg6[%c0_10, %c0_11] : memref<8x16xf32, #tpu.memory_space<vmem>>, vector<8x16xf32>
    tpu.vector_store %arg6[%c0_10, %c0_11], %10 {strides = array<i32>} : memref<8x16xf32, #tpu.memory_space<vmem>>, vector<8x16xf32>,
    return
  }
  func.func @transform_0(%arg0: i32) -> (i32, i32) {
    %c0_i32 = arith.constant 0 : i32
    %c0_i32_0 = arith.constant 0 : i32
    return %arg0, %c0_i32 : i32, i32
  }
  func.func @transform_1(%arg0: i32) -> (i32, i32) {
    %c0_i32 = arith.constant 0 : i32
    %c0_i32_0 = arith.constant 0 : i32
    %c0_i32_1 = arith.constant 0 : i32
    return %c0_i32, %c0_i32_0 : i32, i32
  }
  func.func @transform_2(%arg0: i32) -> (i32, i32) {
    %c0_i32 = arith.constant 0 : i32
    %c0_i32_0 = arith.constant 0 : i32
    %c0_i32_1 = arith.constant 0 : i32
    return %c0_i32, %c0_i32_0 : i32, i32
  }
  func.func @transform_3(%arg0: i32) -> (i32, i32) {
    %c0_i32 = arith.constant 0 : i32
    %c0_i32_0 = arith.constant 0 : i32
    %c0_i32_1 = arith.constant 0 : i32
    return %c0_i32, %c0_i32_0 : i32, i32
  }
  func.func @transform_4(%arg0: i32) -> (i32, i32) {
    %c0_i32 = arith.constant 0 : i32
    %c0_i32_0 = arith.constant 0 : i32
    %c0_i32_1 = arith.constant 0 : i32
    return %c0_i32, %c0_i32_0 : i32, i32
  }
  func.func @transform_5(%arg0: i32) -> (i32, i32) {
    %c0_i32 = arith.constant 0 : i32
    %c0_i32_0 = arith.constant 0 : i32
    return %arg0, %c0_i32 : i32, i32
  }
}

</mosaic_0001>

<bundles_post_ra>
// kernel: feat_classifier_two_forward.1
= control target key start
LH: loop header
LB: loop body
LE: loop exit
PB: predicated region body
PF: predicated region fallthrough
CT: control target
= control target key end

     0   :  { %v345_v7 = vmov 0.0   ;;  %vm42_vm0 = vcmask 261120   ;;  %s518_s0 = inlined_call_operand.vmem [shape: f32[8,32], index: 0, kind: input, shape index: {}]   ;;  %s519_s1 = inlined_call_operand.vmem [shape: f32[32,256], index: 1, kind: input, shape index: {}]   ;;  %s520_s2 = inlined_call_operand.vmem [shape: f32[1,256], index: 2, kind: input, shape index: {}]   ;;  %s521_s3 = inlined_call_operand.vmem [shape: f32[256,16], index: 3, kind: input, shape index: {}]   ;;  %s522_s4 = inlined_call_operand.vmem [shape: f32[1,16], index: 4, kind: input, shape index: {}]   ;;  %s523_s5 = inlined_call_operand.hbm [shape: f32[8,16], index: 5, kind: output, shape index: {}]  }
   0x1   :  { %v23_v0 = vld [vmem:[%s519_s1 + $0x8] sm:$0xff]  ;;  %v25_v1 = vld [vmem:[%s519_s1 + $0x18] sm:$0xff]  ;;  %v22_v2 = vld [vmem:[%s519_s1] sm:$0xff]  ;;  %110 = vmatprep.mubr.f32.mxu0 %v345_v7 }
   0x2   :  { %v279_v3 = vpack.c.bf16 %v25_v1, %v23_v0  ;;  %v24_v4 = vld [vmem:[%s519_s1 + $0x10] sm:$0xff]  ;;  %v27_v5 = vld [vmem:[%s519_s1 + $0x28] sm:$0xff]  ;;  %v29_v6 = vld [vmem:[%s519_s1 + $0x38] sm:$0xff] }
   0x3   :  { %v281_v8 = vpack.c.bf16 %v24_v4, %v22_v2  ;;  %v283_v9 = vpack.c.bf16 %v29_v6, %v27_v5  ;;  %v26_v10 = vld [vmem:[%s519_s1 + $0x20] sm:$0xff]  ;;  %v28_v11 = vld [vmem:[%s519_s1 + $0x30] sm:$0xff]  ;;  %v134_v13 = vld [vmem:[%s521_s3 + $0x88] sm:$0xff] }
   0x4   :  { %280 = vmatprep.subr.bf16.mxu0 %v279_v3  ;;  %v133_v12 = vld [vmem:[%s521_s3 + $0x80] sm:$0xff]  ;;  %v285_v15 = vpack.c.bf16 %v28_v11, %v26_v10  ;;  %v118_v17 = vld [vmem:[%s521_s3 + $0x8] sm:$0xff]  ;;  %v135_v18 = vld [vmem:[%s521_s3 + $0x90] sm:$0xff] }
   0x5   :  { %v117_v14 = vld [vmem:[%s521_s3] sm:$0xff]  ;;  %282 = vmatpush1.bf16.msra.mxu0 %v281_v8  ;;  %v287_v16 = vpack.c.bf16 %v134_v13, %v133_v12  ;;  %v136_v19 = vld [vmem:[%s521_s3 + $0x98] sm:$0xff]  ;;  %v119_v22 = vld [vmem:[%s521_s3 + $0x10] sm:$0xff] }
   0x6   :  { %284 = vmatprep.subr.bf16.mxu0 %v283_v9  ;;  %v289_v20 = vpack.c.bf16 %v118_v17, %v117_v14  ;;  %v291_v21 = vpack.c.bf16 %v136_v19, %v135_v18  ;;  %v120_v23 = vld [vmem:[%s521_s3 + $0x18] sm:$0xff]  ;;  %v137_v24 = vld [vmem:[%s521_s3 + $0xa0] sm:$0xff]  ;;  %v138_v25 = vld [vmem:[%s521_s3 + $0xa8] sm:$0xff] }
   0x7   :  { %288 = vmatprep.subr.bf16.mxu1 %v287_v16  ;;  %v293_v26 = vpack.c.bf16 %v120_v23, %v119_v22  ;;  %v21_v27 = vld [vmem:[%s518_s0] sm:$0xff]  ;;  %v295_v28 = vpack.c.bf16 %v138_v25, %v137_v24  ;;  %v122_v30 = vld [vmem:[%s521_s3 + $0x28] sm:$0xff]  ;;  %v139_v31 = vld [vmem:[%s521_s3 + $0xb0] sm:$0xff] }
   0x8   :  { %290 = vmatpush3.bf16.msra.mxu1 %v289_v20  ;;  %v121_v29 = vld [vmem:[%s521_s3 + $0x20] sm:$0xff]  ;;  %v140_v32 = vld [vmem:[%s521_s3 + $0xb8] sm:$0xff]  ;;  %v123_v35 = vld [vmem:[%s521_s3 + $0x30] sm:$0xff] }
   0x9   :  { %286 = vmatpush1.bf16.msra.mxu0 %v285_v15  ;;  %292 = vmatprep.subr.bf16.mxu1 %v291_v21  ;;  %v297_v33 = vpack.c.bf16 %v122_v30, %v121_v29  ;;  %v299_v34 = vpack.c.bf16 %v140_v32, %v139_v31  ;;  %v124_v36 = vld [vmem:[%s521_s3 + $0x38] sm:$0xff] }
   0xc   :  { %242 = vmatmul.mubr.msk.f32.vlgmr.msra.gmra.mrb[0].mxu0 %vm42_vm0, %v21_v27  ;;  %294 = vmatpush3.bf16.msra.mxu1 %v293_v26 }
   0xd   :  { %296 = vmatprep.subr.bf16.mxu1 %v295_v28 }
   0xe   :  { %10 = vsyncpa [#allocation3], 0  ;;  %v141_v37 = vld [vmem:[%s521_s3 + $0xc0] sm:$0xff]  ;;  %v142_v38 = vld [vmem:[%s521_s3 + $0xc8] sm:$0xff]  ;;  %v301_v39 = vpack.c.bf16 %v124_v36, %v123_v35  ;;  %v32_v62 = vlaneseq  ;;  %s346_s23 = smov [#allocation2]   ;;  %vm226_vm1 = vcmask 130048  }
   0xf   :  { %v303_v40 = vpack.c.bf16 %v142_v38, %v141_v37  ;;  %v125_v41 = vld [vmem:[%s521_s3 + $0x40] sm:$0xff]  ;;  %v126_v42 = vld [vmem:[%s521_s3 + $0x48] sm:$0xff]  ;;  %v143_v43 = vld [vmem:[%s521_s3 + $0xd0] sm:$0xff]  ;;  %s234_s24 = sshll.u32 %s346_s23, 4  ;;  %s235_s24 = int_to_ptr.vmem [resolvable:$true] %s234_s24 }
  0x10   :  { %298 = vmatpush3.bf16.msra.mxu1 %v297_v33  ;;  %v144_v44 = vld [vmem:[%s521_s3 + $0xd8] sm:$0xff]  ;;  %v305_v45 = vpack.c.bf16 %v126_v42, %v125_v41  ;;  %v127_v47 = vld [vmem:[%s521_s3 + $0x50] sm:$0xff]  ;;  %v145_v49 = vld [vmem:[%s521_s3 + $0xe0] sm:$0xff]  ;;  %v33_v63 = vshrl.u32 %v32_v62, 7  ;;  %p326_p1 = scmp.lt.s32.totalorder %s235_s24, %s235_s24 }
  0x11   :  { %300 = vmatprep.subr.bf16.mxu1 %v299_v34  ;;  %v307_v46 = vpack.c.bf16 %v144_v44, %v143_v43  ;;  %v128_v48 = vld [vmem:[%s521_s3 + $0x58] sm:$0xff]  ;;  %v146_v50 = vld [vmem:[%s521_s3 + $0xe8] sm:$0xff]  ;;  %v129_v53 = vld [vmem:[%s521_s3 + $0x60] sm:$0xff] }
  0x12   :  { %v309_v51 = vpack.c.bf16 %v128_v48, %v127_v47  ;;  %v311_v52 = vpack.c.bf16 %v146_v50, %v145_v49  ;;  %v130_v54 = vld [vmem:[%s521_s3 + $0x68] sm:$0xff]  ;;  %v147_v56 = vld [vmem:[%s521_s3 + $0xf0] sm:$0xff]  ;;  %v148_v57 = vld [vmem:[%s521_s3 + $0xf8] sm:$0xff]  ;;  %v38_v0 = vsub.s32 1, %v33_v63  ;;  %v34_v2 = vsub.s32 0, %v33_v63 }
  0x13   :  { %v313_v55 = vpack.c.bf16 %v130_v54, %v129_v53  ;;  %v315_v58 = vpack.c.bf16 %v148_v57, %v147_v56  ;;  %v131_v59 = vld [vmem:[%s521_s3 + $0x70] sm:$0xff]  ;;  %v132_v60 = vld [vmem:[%s521_s3 + $0x78] sm:$0xff]  ;;  %v30_v1 = vld [vmem:[%s520_s2] sm:$0x3]  ;;  %s321_s2 = scalar_lea.vmem %s235_s24, 128 }
  0x14   :  { %302 = vmatpush3.bf16.msra.mxu1 %v301_v39  ;;  %v317_v61 = vpack.c.bf16 %v132_v60, %v131_v59  ;;  %v39_v3 = vrot.slane %v30_v1, %v38_v0  ;;  %v35_v4 = vrot.slane %v30_v1, %v34_v2  ;;  %v243_v10 = vld [vmem:[%s522_s4] ss:$0 sm:$0xff]  ;;  %p322_p0 = scmp.ne.s32.totalorder %s235_s24, %s321_s2  ;;  %p327_p2 = scmp.lt.s32.totalorder %s321_s2, %s321_s2 }
  0x15   :  { %304 = vmatprep.subr.bf16.mxu1 %v303_v40 }
  0x16   :  { %p328_p3 = por %p327_p2, %p326_p1 }
  0x18   :  { %306 = vmatpush3.bf16.msra.mxu1 %v305_v45  ;;  %p329_p4 = pnand %p328_p3, %p322_p0 }
  0x19   :  { %308 = vmatprep.subr.bf16.mxu1 %v307_v46 }
  0x1c   :  { %310 = vmatpush3.bf16.msra.mxu1 %v309_v51 }
  0x1d   :  { %312 = vmatprep.subr.bf16.mxu1 %v311_v52 }
  0x20   :  { %314 = vmatpush3.bf16.msra.mxu1 %v313_v55 }
  0x21   :  { %316 = vmatprep.subr.bf16.mxu1 %v315_v58 }
  0x24   :  { %318 = vmatpush3.bf16.msra.mxu1 %v317_v61 }
  0xdf   :  { %v112_v5 = vpop.f32.mrb[0].mxu0 }
  0xe0   :  { %v114_v6 = vpop.f32.mrb[1].mxu0  ;;  %v113_v8 = vadd.f32 %v112_v5, %v35_v4 }
  0xe1   :  { %v115_v7 = vadd.f32 %v114_v6, %v39_v3 }
  0xe3   :  { %220 = vmatprep.mubr.f32.mxu1 %v115_v7 }
  0xe4   :  { %221 = vmatmul.mubr.f32.vlgmr.msra.gmra.mrb[0].mxu1 %v113_v8 }
 0x1b7   :  { %v276_v9 = vpop.f32.mrb[0].mxu1 }
 0x1b8   :  { %v277_v11 = vpop.f32.mrb[1].mxu1 }
 0x1b9   :  { %v278_v12 = vadd.f32 %v277_v11, %v276_v9 }
 0x1bb   :  { %v223_v13 = vadd.f32 %v278_v12, %v243_v10 }
 0x1bd   :  { %227 = vst.msk [vmem:[#allocation2] sm:$0xff] %vm226_vm1, %v223_v13 }
 0x1be   :  { %332 = shalt.err (!%p329_p4)
}
 0x1bf   :  { %s333_s27 = scalar_lea.hbm %s523_s5, 128 }
 0x1c0   :  { %p334_p5 = scmp.ne.s32.totalorder %s523_s5, %s333_s27  ;;  %p337_p6 = scmp.lt.u32.totalorder %s333_s27, %s523_s5 }
 0x1c2   :  { %p339_p7 = pnand %p337_p6, %p334_p5 }
 0x1c4   :  { %342 = shalt.err (!%p339_p7)
}
 0x1c5   :  { %237 = dma.vmem_to_hbm [thread:$0]  %s235_s24, 128, %s523_s5, [#allocation3]  }
 0x1c6   :  { %343 = dma.done.wait [#allocation3], 128  }
 0x1c7   :  { %344 = vsyncadd [#allocation3], 4294967168 }
 0x1c8   :  { %241 = vsyncpa [#allocation3], 1 }

</bundles_post_ra>
